<compile_context>
chip_gen: v7x
topology: tpu7x:2x2x1
jax: 0.10.0
libtpu: 0.0.40
codegen_flags: <defaults>
</compile_context>

<pallas_src>
import math

import jax
import jax.numpy as jnp
from jax.experimental import pallas as pl
from jax.experimental.pallas import tpu as pltpu


def _relu_kernel(x_ref, o_ref):
    # Pure VPU elementwise: one vmax per vreg. Kernel is HBM-bandwidth bound.
    o_ref[...] = jnp.maximum(x_ref[...], 0)


def _round_up(a: int, b: int) -> int:
    return ((a + b - 1) // b) * b


_LANE_CANDIDATES = (4096, 2048, 1024, 512, 256, 128)


def swish_forward(x: jax.Array, *, target_tile_bytes: int = 4 * 1024 * 1024) -> jax.Array:
    """Forward pass of the `Swish` module (which is really nn.ReLU): max(x, 0).

    Accepts any shape (..., dims); returns the same shape/dtype.
    """
    orig_shape = x.shape
    dtype = x.dtype
    n = math.prod(orig_shape) if orig_shape else 1
    if n == 0:
        return x

    itemsize = jnp.dtype(dtype).itemsize
    sub = max(8, 32 // itemsize)  # sublane packing: 8 f32, 16 bf16, 32 int8/fp8

    flat = x.reshape(-1)

    # Lane-dense layout: widest L (multiple of 128) that divides the element
    # count, so stores are unmasked full-lane vst. If n is not a multiple of
    # 128 (rare for GPT-2 activation shapes), fall back to padding the flat
    # vector — ReLU(0) == 0, padding is sliced off afterwards.
    lane = None
    for cand in _LANE_CANDIDATES:
        if n % cand == 0:
            lane = cand
            break
    padded_n = n
    if lane is None:
        lane = 1024
        padded_n = _round_up(n, lane)
        flat = jnp.pad(flat, (0, padded_n - n))

    rows = padded_n // lane
    x2d = flat.reshape(rows, lane)

    # Row tile sized in bytes (~target_tile_bytes), aligned to sublane packing.
    row_bytes = lane * itemsize
    tr = max(sub, (target_tile_bytes // row_bytes) // sub * sub)
    if rows <= tr:
        if rows >= 2 * sub:
            # Small input that fits one block: still split into 2 blocks so a
            # v7x chip can shard the "parallel" grid axis across both TCs.
            tr = _round_up(pl.cdiv(rows, 2), sub)
        else:
            tr = rows  # block row dim == full array extent (always legal)
    grid = (pl.cdiv(rows, tr),)  # last block may be partial; Pallas masks it.

    tile_bytes = tr * lane * itemsize
    # Double-buffered input + output = 4 tiles; add headroom, stay well under
    # v7x's 64 MiB physical VMEM while exceeding v5e's 16 MiB scoped default.
    vmem_limit = min(max(4 * tile_bytes + (4 << 20), 16 << 20), 48 << 20)

    out2d = pl.pallas_call(
        _relu_kernel,
        out_shape=jax.ShapeDtypeStruct((rows, lane), dtype),
        grid_spec=pltpu.PrefetchScalarGridSpec(
            num_scalar_prefetch=0,
            grid=grid,
            in_specs=[pl.BlockSpec((tr, lane), lambda i: (i, 0))],
            out_specs=pl.BlockSpec((tr, lane), lambda i: (i, 0)),
        ),
        compiler_params=pltpu.CompilerParams(
            dimension_semantics=("parallel",),
            vmem_limit_bytes=vmem_limit,
        ),
    )(x2d)

    out_flat = out2d.reshape(-1)
    if padded_n != n:
        out_flat = out_flat[:n]
    return out_flat.reshape(orig_shape)


if __name__ == "__main__":
    key = jax.random.PRNGKey(0)
    # Shape consistent with the module's (..., dims): batch=2, seq=8, hidden=32.
    x = jax.random.normal(key, (2, 8, 32), dtype=jnp.float32)

    out = swish_forward(x)
    out = jax.block_until_ready(out)

    # Correctness check against the pure-JAX reference (ReLU).
    ref = jnp.maximum(x, 0.0)
    assert out.shape == x.shape and out.dtype == x.dtype
    assert bool(jnp.allclose(out, ref)), "Pallas ReLU mismatch vs reference"

    print("KERNEL_OK")
</pallas_src>

<mosaic_0001>
module attributes {stable_mosaic.version = 11 : i64} {
  func.func @_relu_kernel(%arg0: i32, %arg1: memref<1x512xf32, #tpu.memory_space<vmem>>, %arg2: memref<1x512xf32, #tpu.memory_space<vmem>>) attributes {dimension_semantics = [#tpu.dimension_semantics<parallel>], iteration_bounds = array<i64: 1>, scalar_prefetch = 0 : i64, scratch_operands = 0 : i64, tpu.core_type = #tpu.core_type<tc>, window_params = [{transform_indices = @transform_0, window_bounds = array<i64: 1, 512>}, {transform_indices = @transform_1, window_bounds = array<i64: 1, 512>}]} {
    %c0 = arith.constant 0 : index
    %c0_0 = arith.constant 0 : index
    %0 = vector.load %arg1[%c0, %c0_0] : memref<1x512xf32, #tpu.memory_space<vmem>>, vector<1x512xf32>
    %cst = arith.constant 0.000000e+00 : f32
    %1 = vector.broadcast %cst : f32 to vector<1x512xf32>
    %2 = arith.maximumf %0, %1 : vector<1x512xf32>
    %c0_1 = arith.constant 0 : index
    %c0_2 = arith.constant 0 : index
    %3 = vector.load %arg2[%c0_1, %c0_2] : memref<1x512xf32, #tpu.memory_space<vmem>>, vector<1x512xf32>
    tpu.vector_store %arg2[%c0_1, %c0_2], %2 {strides = array<i32>} : memref<1x512xf32, #tpu.memory_space<vmem>>, vector<1x512xf32>,
    return
  }
  func.func @transform_0(%arg0: i32) -> (i32, i32) {
    %c0_i32 = arith.constant 0 : i32
    %c0_i32_0 = arith.constant 0 : i32
    return %arg0, %c0_i32 : i32, i32
  }
  func.func @transform_1(%arg0: i32) -> (i32, i32) {
    %c0_i32 = arith.constant 0 : i32
    %c0_i32_0 = arith.constant 0 : i32
    return %arg0, %c0_i32 : i32, i32
  }
}

</mosaic_0001>

<bundles_post_ra>
// kernel: tpu_custom_call.1
= control target key start
LH: loop header
LB: loop body
LE: loop exit
PB: predicated region body
PF: predicated region fallthrough
CT: control target
= control target key end

     0   :  { %6 = vsyncpa [#allocation3], 0  ;;  %s129_s0 = inlined_call_operand.hbm [shape: f32[1,512], index: 0, kind: input, shape index: {}]   ;;  %s130_s1 = inlined_call_operand.hbm [shape: f32[1,512], index: 1, kind: output, shape index: {}]  }
   0x1   :  { %7 = vsyncpa [#allocation4], 0  ;;  %s93_s6 = smov [#allocation2]   ;;  %s45_s10 = scalar_lea.hbm %s129_s0, 64 }
   0x2   :  { %s14_s7 = sshll.u32 %s93_s6, 4  ;;  %p46_p0 = scmp.ne.s32.totalorder %s129_s0, %s45_s10  ;;  %s15_s7 = int_to_ptr.vmem [resolvable:$true] %s14_s7 }
   0x3   :  { %p49_p1 = scmp.lt.u32.totalorder %s45_s10, %s129_s0 }
   0x5   :  { %p51_p2 = pnand %p49_p1, %p46_p0 }
   0x7   :  { %54 = shalt.err (!%p51_p2)
}
   0x8   :  { %s55_s15 = scalar_lea.vmem %s15_s7, 64  ;;  %p60_p4 = scmp.lt.s32.totalorder %s15_s7, %s15_s7 }
   0x9   :  { %p56_p3 = scmp.ne.s32.totalorder %s15_s7, %s55_s15  ;;  %p61_p5 = scmp.lt.s32.totalorder %s55_s15, %s55_s15 }
   0xb   :  { %p62_p6 = por %p61_p5, %p60_p4 }
   0xd   :  { %p63_p7 = pnand %p62_p6, %p56_p3 }
   0xf   :  { %66 = shalt.err (!%p63_p7)
}
  0x10   :  { %17 = dma.hbm_to_vmem [thread:$0]  %s129_s0, 64, %s15_s7, [#allocation3]  }
  0x11   :  { %89 = dma.done.wait [#allocation3], 64  }
  0x12   :  { %90 = vsyncadd [#allocation3], 4294967232  ;;  %v23_v0 = vlaneseq  ;;  %s94_s18 = smov [#allocation5]   ;;  %v21_v1 = vld [vmem:[#allocation2] sm:$0xf] }
  0x13   :  { %s34_s19 = sshll.u32 %s94_s18, 4  ;;  %v22_v2 = vmax.f32 %v21_v1, 0.0  ;;  %s35_s19 = int_to_ptr.vmem [resolvable:$true] %s34_s19 }
  0x14   :  { %vm25_vm0 = vcmp.lt.s32.totalorder %v23_v0, 512  ;;  %s67_s20 = scalar_lea.vmem %s35_s19, 64  ;;  %p72_p9 = scmp.lt.s32.totalorder %s35_s19, %s35_s19 }
  0x15   :  { %27 = vst.msk [vmem:[#allocation5] sm:$0xf] %vm25_vm0, %v22_v2  ;;  %p68_p8 = scmp.ne.s32.totalorder %s35_s19, %s67_s20  ;;  %p73_p10 = scmp.lt.s32.totalorder %s67_s20, %s67_s20 }
  0x17   :  { %p74_p11 = por %p73_p10, %p72_p9 }
  0x19   :  { %p75_p12 = pnand %p74_p11, %p68_p8 }
  0x1b   :  { %78 = shalt.err (!%p75_p12)
}
  0x1c   :  { %s79_s0 = scalar_lea.hbm %s130_s1, 64 }
  0x1d   :  { %p80_p13 = scmp.ne.s32.totalorder %s130_s1, %s79_s0  ;;  %p83_p0 = scmp.lt.u32.totalorder %s79_s0, %s130_s1 }
  0x1f   :  { %p85_p1 = pnand %p83_p0, %p80_p13 }
  0x21   :  { %88 = shalt.err (!%p85_p1)
}
  0x22   :  { %37 = dma.vmem_to_hbm [thread:$0]  %s35_s19, 64, %s130_s1, [#allocation4]  }
  0x23   :  { %91 = dma.done.wait [#allocation4], 64  }
  0x24   :  { %92 = vsyncadd [#allocation4], 4294967232 }
  0x25   :  { %41 = vsyncpa [#allocation3], 1 }
  0x26   :  { %42 = vsyncpa [#allocation4], 1 }

</bundles_post_ra>
